<compile_context>
chip_gen: v6e
topology: v6e:2x2x1
jax: 0.10.0
libtpu: 0.0.40
codegen_flags: <defaults>
</compile_context>

<pallas_src>
import math
import functools

import jax
import jax.numpy as jnp
from jax import lax
from jax.experimental import pallas as pl
from jax.experimental.pallas import tpu as pltpu


# --------------------------------------------------------------------------
# helpers
# --------------------------------------------------------------------------
def _pick_tile(dim: int, cap: int) -> int:
    """Largest power-of-two-ish tile <= cap that divides dim (full dim if small)."""
    if dim <= cap:
        return dim
    t = cap
    while t > 1 and dim % t:
        t //= 2
    return t


# --------------------------------------------------------------------------
# Tiled linear:  (M, K) @ (K, N) + b  with f32 accumulation
# --------------------------------------------------------------------------
def _linear_kernel(x_ref, w_ref, b_ref, o_ref, acc_ref):
    k = pl.program_id(2)

    @pl.when(k == 0)
    def _():
        acc_ref[...] = jnp.zeros_like(acc_ref)

    # Feed native-dtype operands to the MXU; accumulate in f32.
    acc_ref[...] += jnp.dot(x_ref[...], w_ref[...],
                            preferred_element_type=jnp.float32)

    @pl.when(k == pl.num_programs(2) - 1)
    def _():
        out = acc_ref[...] + b_ref[...].astype(jnp.float32)   # (tm,tn)+(1,tn)
        o_ref[...] = out.astype(o_ref.dtype)


def _linear(x2d, w, b, *, tm_cap=256, tn_cap=256, tk_cap=512):
    M, K = x2d.shape
    K2, N = w.shape
    assert K == K2
    tm = _pick_tile(M, tm_cap)
    tn = _pick_tile(N, tn_cap)
    tk = _pick_tile(K, tk_cap)
    b2 = b.reshape(1, N)

    return pl.pallas_call(
        _linear_kernel,
        out_shape=jax.ShapeDtypeStruct((M, N), x2d.dtype),
        grid_spec=pltpu.PrefetchScalarGridSpec(
            num_scalar_prefetch=0,
            grid=(M // tm, N // tn, K // tk),
            in_specs=[
                pl.BlockSpec((tm, tk), lambda i, j, k: (i, k)),
                pl.BlockSpec((tk, tn), lambda i, j, k: (k, j)),
                pl.BlockSpec((1, tn), lambda i, j, k: (0, j)),
            ],
            out_specs=pl.BlockSpec((tm, tn), lambda i, j, k: (i, j)),
            scratch_shapes=[pltpu.VMEM((tm, tn), jnp.float32)],
        ),
        compiler_params=pltpu.CompilerParams(
            dimension_semantics=("parallel", "parallel", "arbitrary")),
    )(x2d, w, b2)


# --------------------------------------------------------------------------
# Flash attention (causal, online softmax)
#   q, k, v : (B*n_head, T, hd)   -> out (B*n_head, T, hd)
# --------------------------------------------------------------------------
def _flash_kernel(q_ref, k_ref, v_ref, o_ref, m_sc, l_sc, acc_sc,
                  *, scale: float, tq: int, tk: int):
    qi = pl.program_id(1)
    ki = pl.program_id(2)

    @pl.when(ki == 0)
    def _():
        m_sc[...] = jnp.full_like(m_sc, -jnp.inf)
        l_sc[...] = jnp.zeros_like(l_sc)
        acc_sc[...] = jnp.zeros_like(acc_sc)

    # Block classification w.r.t. the causal diagonal.
    #   visible       : block contains at least one unmasked element
    #   fully_visible : every element in the block is unmasked (no mask work)
    visible = ki * tk < (qi + 1) * tq
    fully_visible = qi * tq >= ki * tk + tk - 1

    def _update(apply_mask: bool):
        # Fold 1/sqrt(hd) into q (tq x hd) instead of the (tq x tk) scores.
        q = q_ref[0] * scale                                   # native dtype
        s = jnp.dot(q, k_ref[0].T,
                    preferred_element_type=jnp.float32)        # (tq, tk) f32

        if apply_mask:
            # Causal mask with a large finite negative (no -inf -> no NaN rows).
            row = qi * tq + lax.broadcasted_iota(jnp.int32, (tq, tk), 0)
            col = ki * tk + lax.broadcasted_iota(jnp.int32, (tq, tk), 1)
            s = jnp.where(row >= col, s, -1e30)

        m_prev = m_sc[...]                                     # (tq, 1)
        m_new = jnp.maximum(m_prev, jnp.max(s, axis=-1, keepdims=True))
        alpha = jnp.exp(m_prev - m_new)
        p = jnp.exp(s - m_new)                                 # (tq, tk) f32

        l_sc[...] = alpha * l_sc[...] + jnp.sum(p, axis=-1, keepdims=True)
        acc_sc[...] = alpha * acc_sc[...] + jnp.dot(
            p.astype(v_ref.dtype), v_ref[0],
            preferred_element_type=jnp.float32)
        m_sc[...] = m_new

    # Interior blocks: no mask computation at all.
    @pl.when(fully_visible)
    def _():
        _update(apply_mask=False)

    # Blocks straddling the diagonal: apply the causal mask.
    @pl.when(jnp.logical_and(visible, jnp.logical_not(fully_visible)))
    def _():
        _update(apply_mask=True)

    @pl.when(ki == pl.num_programs(2) - 1)
    def _():
        inv_l = pl.reciprocal(l_sc[...], approx=True)          # EUP slot
        o_ref[0] = (acc_sc[...] * inv_l).astype(o_ref.dtype)


def _flash_attention(q, k, v):
    BH, T, hd = q.shape
    tq = _pick_tile(T, 128)
    tk = _pick_tile(T, 128)
    scale = 1.0 / math.sqrt(hd)
    kernel = functools.partial(_flash_kernel, scale=scale, tq=tq, tk=tk)

    # K/V index maps clamp the kv block to the causal limit so fully-masked
    # blocks never touch HBM (consecutive identical block indices are deduped
    # by the pipeline).
    def kv_map(bh, qi, ki):
        kv_limit = ((qi + 1) * tq - 1) // tk
        return (bh, jnp.minimum(ki, kv_limit), 0)

    return pl.pallas_call(
        kernel,
        out_shape=jax.ShapeDtypeStruct((BH, T, hd), q.dtype),
        grid_spec=pltpu.PrefetchScalarGridSpec(
            num_scalar_prefetch=0,
            grid=(BH, T // tq, T // tk),
            in_specs=[
                pl.BlockSpec((1, tq, hd), lambda bh, qi, ki: (bh, qi, 0)),
                pl.BlockSpec((1, tk, hd), kv_map),
                pl.BlockSpec((1, tk, hd), kv_map),
            ],
            out_specs=pl.BlockSpec((1, tq, hd), lambda bh, qi, ki: (bh, qi, 0)),
            scratch_shapes=[
                pltpu.VMEM((tq, 1), jnp.float32),    # running max m
                pltpu.VMEM((tq, 1), jnp.float32),    # running denom l
                pltpu.VMEM((tq, hd), jnp.float32),   # output accumulator
            ],
        ),
        compiler_params=pltpu.CompilerParams(
            dimension_semantics=("parallel", "parallel", "arbitrary")),
    )(q, k, v)


# --------------------------------------------------------------------------
# Full module forward
# --------------------------------------------------------------------------
def causal_self_attention(x, w_qkv, b_qkv, w_proj, b_proj, n_head):
    """x: (B, T, C); w_qkv: (C, 3C); b_qkv: (3C,); w_proj: (C, C); b_proj: (C,)."""
    B, T, C = x.shape
    hd = C // n_head

    # QKV projection (tiled Pallas matmul).
    qkv = _linear(x.reshape(B * T, C), w_qkv, b_qkv)           # (B*T, 3C)

    # Split heads (layout plumbing in plain XLA).
    qkv = qkv.reshape(B, T, 3, n_head, hd)
    q = qkv[:, :, 0].transpose(0, 2, 1, 3).reshape(B * n_head, T, hd)
    k = qkv[:, :, 1].transpose(0, 2, 1, 3).reshape(B * n_head, T, hd)
    v = qkv[:, :, 2].transpose(0, 2, 1, 3).reshape(B * n_head, T, hd)

    # TODO(synk): attn_drop / proj_drop omitted (dropout p = 0 at inference).
    y = _flash_attention(q, k, v)                              # (B*nh, T, hd)

    # Merge heads and output projection.
    y = y.reshape(B, n_head, T, hd).transpose(0, 2, 1, 3).reshape(B * T, C)
    out = _linear(y, w_proj, b_proj)                           # (B*T, C)
    return out.reshape(B, T, C)


# --------------------------------------------------------------------------
# Pure-JAX reference mirroring the PyTorch forward
# --------------------------------------------------------------------------
def reference_attention(x, w_qkv, b_qkv, w_proj, b_proj, n_head):
    B, T, C = x.shape
    hd = C // n_head
    qkv = x @ w_qkv + b_qkv
    q, k, v = jnp.split(qkv, 3, axis=-1)
    q = q.reshape(B, T, n_head, hd).transpose(0, 2, 1, 3)
    k = k.reshape(B, T, n_head, hd).transpose(0, 2, 1, 3)
    v = v.reshape(B, T, n_head, hd).transpose(0, 2, 1, 3)
    scores = jnp.einsum("bhqd,bhkd->bhqk", q, k) / math.sqrt(hd)
    mask = jnp.tril(jnp.ones((T, T), dtype=bool))
    scores = jnp.where(mask, scores, -jnp.inf)
    p = jax.nn.softmax(scores, axis=-1)
    y = jnp.einsum("bhqk,bhkd->bhqd", p, v)
    y = y.transpose(0, 2, 1, 3).reshape(B, T, C)
    return y @ w_proj + b_proj


def _make_inputs(key, B, T, C):
    kx, k1, k2, k3, k4 = jax.random.split(key, 5)
    x = jax.random.normal(kx, (B, T, C), dtype=jnp.float32)
    w_qkv = jax.random.normal(k1, (C, 3 * C), dtype=jnp.float32) * 0.02
    b_qkv = jax.random.normal(k2, (3 * C,), dtype=jnp.float32) * 0.02
    w_proj = jax.random.normal(k3, (C, C), dtype=jnp.float32) * 0.02
    b_proj = jax.random.normal(k4, (C,), dtype=jnp.float32) * 0.02
    return x, w_qkv, b_qkv, w_proj, b_proj


if __name__ == "__main__":
    key = jax.random.PRNGKey(0)
    key1, key2 = jax.random.split(key)

    # cfg: n_embd=32, n_head=4, block_size>=T, bias=True, dropout=0.0
    for (B, T, C, n_head, k_i) in [(2, 8, 32, 4, key1),      # tiny (single tile)
                                   (2, 256, 256, 4, key2)]:  # exercises tiling +
                                                             # causal block skipping
        x, w_qkv, b_qkv, w_proj, b_proj = _make_inputs(k_i, B, T, C)

        out = causal_self_attention(x, w_qkv, b_qkv, w_proj, b_proj, n_head)
        out = jax.block_until_ready(out)

        ref = reference_attention(x, w_qkv, b_qkv, w_proj, b_proj, n_head)
        assert out.shape == (B, T, C)
        err = float(jnp.max(jnp.abs(out - ref)))
        assert jnp.allclose(out, ref, atol=2e-3, rtol=2e-3), \
            f"mismatch vs reference at (B,T,C,H)=({B},{T},{C},{n_head}), max err {err}"

    print("KERNEL_OK")
</pallas_src>

<mosaic_0001>
module attributes {stable_mosaic.version = 11 : i64} {
  func.func @_linear_kernel(%arg0: i32, %arg1: i32, %arg2: i32, %arg3: memref<16x32xf32, #tpu.memory_space<vmem>>, %arg4: memref<32x96xf32, #tpu.memory_space<vmem>>, %arg5: memref<1x96xf32, #tpu.memory_space<vmem>>, %arg6: memref<16x96xf32, #tpu.memory_space<vmem>>, %arg7: memref<16x96xf32, #tpu.memory_space<vmem>>) attributes {dimension_semantics = [#tpu.dimension_semantics<parallel>, #tpu.dimension_semantics<parallel>, #tpu.dimension_semantics<arbitrary>], iteration_bounds = array<i64: 1, 1, 1>, scalar_prefetch = 0 : i64, scratch_operands = 1 : i64, tpu.core_type = #tpu.core_type<tc>, window_params = [{transform_indices = @transform_0, window_bounds = array<i64: 16, 32>}, {transform_indices = @transform_1, window_bounds = array<i64: 32, 96>}, {transform_indices = @transform_2, window_bounds = array<i64: 1, 96>}, {transform_indices = @transform_3, window_bounds = array<i64: 16, 96>}]} {
    %c0_i32 = arith.constant 0 : i32
    %0 = arith.cmpi eq, %arg2, %c0_i32 : i32
    %1 = arith.extui %0 : i1 to i32
    %c0_i32_0 = arith.constant 0 : i32
    %2 = arith.cmpi ne, %1, %c0_i32_0 : i32
    scf.if %2 {
      %cst_10 = arith.constant 0.000000e+00 : f32
      %12 = vector.broadcast %cst_10 : f32 to vector<16x96xf32>
      %c0_11 = arith.constant 0 : index
      %c0_12 = arith.constant 0 : index
      %13 = vector.load %arg7[%c0_11, %c0_12] : memref<16x96xf32, #tpu.memory_space<vmem>>, vector<16x96xf32>
      tpu.vector_store %arg7[%c0_11, %c0_12], %12 {strides = array<i32>} : memref<16x96xf32, #tpu.memory_space<vmem>>, vector<16x96xf32>,
    } else {
    }
    %c0 = arith.constant 0 : index
    %c0_1 = arith.constant 0 : index
    %3 = vector.load %arg7[%c0, %c0_1] : memref<16x96xf32, #tpu.memory_space<vmem>>, vector<16x96xf32>
    %c0_2 = arith.constant 0 : index
    %c0_3 = arith.constant 0 : index
    %4 = vector.load %arg3[%c0_2, %c0_3] : memref<16x32xf32, #tpu.memory_space<vmem>>, vector<16x32xf32>
    %c0_4 = arith.constant 0 : index
    %c0_5 = arith.constant 0 : index
    %5 = vector.load %arg4[%c0_4, %c0_5] : memref<32x96xf32, #tpu.memory_space<vmem>>, vector<32x96xf32>
    %cst = arith.constant dense<0.000000e+00> : vector<16x96xf32>
    %6 = tpu.matmul %4, %5, %cst {dimension_numbers = #tpu.dot_dimension_numbers<[1], [0], [0], [1], [0, 0, 1, 1], [], []>} : vector<16x32xf32>, vector<32x96xf32>, vector<16x96xf32> -> vector<16x96xf32>
    %7 = arith.addf %3, %6 : vector<16x96xf32>
    %c0_6 = arith.constant 0 : index
    %c0_7 = arith.constant 0 : index
    %8 = vector.load %arg7[%c0_6, %c0_7] : memref<16x96xf32, #tpu.memory_space<vmem>>, vector<16x96xf32>
    tpu.vector_store %arg7[%c0_6, %c0_7], %7 {strides = array<i32>} : memref<16x96xf32, #tpu.memory_space<vmem>>, vector<16x96xf32>,
    %c0_i32_8 = arith.constant 0 : i32
    %9 = arith.cmpi eq, %arg2, %c0_i32_8 : i32
    %10 = arith.extui %9 : i1 to i32
    %c0_i32_9 = arith.constant 0 : i32
    %11 = arith.cmpi ne, %10, %c0_i32_9 : i32
    scf.if %11 {
      %c0_10 = arith.constant 0 : index
      %c0_11 = arith.constant 0 : index
      %12 = vector.load %arg7[%c0_10, %c0_11] : memref<16x96xf32, #tpu.memory_space<vmem>>, vector<16x96xf32>
      %c0_12 = arith.constant 0 : index
      %c0_13 = arith.constant 0 : index
      %13 = vector.load %arg5[%c0_12, %c0_13] : memref<1x96xf32, #tpu.memory_space<vmem>>, vector<1x96xf32>
      %14 = vector.broadcast %13 : vector<1x96xf32> to vector<16x96xf32>
      %15 = arith.addf %12, %14 : vector<16x96xf32>
      %c0_14 = arith.constant 0 : index
      %c0_15 = arith.constant 0 : index
      %16 = vector.load %arg6[%c0_14, %c0_15] : memref<16x96xf32, #tpu.memory_space<vmem>>, vector<16x96xf32>
      tpu.vector_store %arg6[%c0_14, %c0_15], %15 {strides = array<i32>} : memref<16x96xf32, #tpu.memory_space<vmem>>, vector<16x96xf32>,
    } else {
    }
    return
  }
  func.func @transform_0(%arg0: i32, %arg1: i32, %arg2: i32) -> (i32, i32) {
    %c0_i32 = arith.constant 0 : i32
    return %arg0, %arg2 : i32, i32
  }
  func.func @transform_1(%arg0: i32, %arg1: i32, %arg2: i32) -> (i32, i32) {
    %c0_i32 = arith.constant 0 : i32
    return %arg2, %arg1 : i32, i32
  }
  func.func @transform_2(%arg0: i32, %arg1: i32, %arg2: i32) -> (i32, i32) {
    %c0_i32 = arith.constant 0 : i32
    %c0_i32_0 = arith.constant 0 : i32
    return %c0_i32, %arg1 : i32, i32
  }
  func.func @transform_3(%arg0: i32, %arg1: i32, %arg2: i32) -> (i32, i32) {
    %c0_i32 = arith.constant 0 : i32
    return %arg0, %arg1 : i32, i32
  }
}

</mosaic_0001>

<bundles_post_ra>
// kernel: tpu_custom_call.1
= control target key start
LH: loop header
LB: loop body
LE: loop exit
PB: predicated region body
PF: predicated region fallthrough
CT: control target
= control target key end

     0   :  { %8 = vsyncpa [#allocation4], 0  ;;  %s326_s0 = inlined_call_operand.hbm [shape: f32[16,32], index: 0, kind: input, shape index: {}]   ;;  %s327_s1 = inlined_call_operand.hbm [shape: f32[32,96], index: 1, kind: input, shape index: {}]   ;;  %s328_s2 = inlined_call_operand.vmem [shape: f32[1,96], index: 2, kind: input, shape index: {}]   ;;  %s329_s3 = inlined_call_operand.hbm [shape: f32[16,96], index: 3, kind: output, shape index: {}]  }
   0x1   :  { %9 = vsyncpa [#allocation7], 0 }
   0x2   :  { %10 = vsyncpa [#allocation5], 0  ;;  %s271_s12 = smov [#allocation3]  }
   0x3   :  { %s16_s13 = sshll.u32 %s271_s12, 4  ;;  %s17_s13 = int_to_ptr.vmem [resolvable:$true] %s16_s13 }
   0x4   :  { %s213_s14 = scalar_lea.vmem %s17_s13, 256  ;;  %p218_p1 = scmp.lt.s32.totalorder %s17_s13, %s17_s13 }
   0x5   :  { %p214_p0 = scmp.ne.s32.totalorder %s17_s13, %s213_s14  ;;  %p219_p2 = scmp.lt.s32.totalorder %s213_s14, %s213_s14 }
   0x7   :  { %p220_p3 = por %p219_p2, %p218_p1 }
   0x9   :  { %p221_p4 = pnand %p220_p3, %p214_p0 }
   0xb   :  { %224 = shalt.err (!%p221_p4)
}
   0xc   :  { %s272_s15 = smov 128   ;;  %s273_s16 = smov 8  }
   0xd   :  { %22 = dma.hbm_to_vmem [thread:$0]  %s326_s0, 256, %s17_s13, [#allocation4], %s272_s15, %s272_s15, %s273_s16  }
   0xe   :  { %s274_s19 = smov [#allocation6]  }
   0xf   :  { %s28_s20 = sshll.u32 %s274_s19, 4  ;;  %s29_s20 = int_to_ptr.vmem [resolvable:$true] %s28_s20 }
  0x10   :  { %s233_s21 = scalar_lea.vmem %s29_s20, 512  ;;  %p238_p6 = scmp.lt.s32.totalorder %s29_s20, %s29_s20 }
  0x11   :  { %p234_p5 = scmp.ne.s32.totalorder %s29_s20, %s233_s21  ;;  %p239_p7 = scmp.lt.s32.totalorder %s233_s21, %s233_s21 }
  0x13   :  { %p240_p8 = por %p239_p7, %p238_p6 }
  0x15   :  { %p241_p9 = pnand %p240_p8, %p234_p5 }
  0x17   :  { %244 = shalt.err (!%p241_p9)
}
  0x18   :  { %34 = dma.hbm_to_vmem [thread:$0]  %s327_s1, 512, %s29_s20, [#allocation7], %s272_s15, %s272_s15, %s273_s16  }
  0x19   :  { %265 = dma.done.wait [#allocation4], 256  }
  0x1a   :  { %266 = vsyncadd [#allocation4], 4294967040 }
  0x1b   :  { %267 = dma.done.wait [#allocation7], 512  }
  0x1c   :  { %268 = vsyncadd [#allocation7], 4294966784  ;;  %vm47_vm0 = vcmask 785408   ;;  %v275_v0 = vmov 0.0   ;;  %vm58_vm1 = vcmask 261120   ;;  %v57_v1 = vld [vmem:[#allocation6 + $0x18] sm:$0xff] }
  0x1d   :  { %49 = vst.msk [vmem:[#allocation2 + $0x8] sm:$0xff] %vm47_vm0, %v275_v0  ;;  %48 = vst.msk [vmem:[#allocation2] sm:$0xff] %vm47_vm0, %v275_v0  ;;  %v56_v2 = vld [vmem:[#allocation6 + $0x10] sm:$0xff]  ;;  %188 = vmatprep.subr.mxu0 %v57_v1  ;;  %v55_v4 = vld [vmem:[#allocation6 + $0x8] sm:$0xff]  ;;  %s276_s24 = smov [#allocation8]  }
  0x1e   :  { %v52_v3 = vld [vmem:[#allocation3] sm:$0xff]  ;;  %189 = vmatpush3.msra.mxu0 %v57_v1  ;;  %v54_v5 = vld [vmem:[#allocation6] sm:$0xff]  ;;  %v53_v6 = vld [vmem:[#allocation3 + $0x8] sm:$0xff]  ;;  %s166_s25 = sshll.u32 %s276_s24, 4  ;;  %s167_s25 = int_to_ptr.vmem [resolvable:$true] %s166_s25 }
  0x1f   :  { %196 = vmatprep.mubr.msk.f32.mxu0 %vm58_vm1, %v52_v3  ;;  %190 = vmatprep.subr.mxu0 %v56_v2  ;;  %v181_v13 = vld [vmem:[%s328_s2] ss:$0 sm:$0xff]  ;;  %s245_s26 = scalar_lea.vmem %s167_s25, 256  ;;  %p250_p11 = scmp.lt.s32.totalorder %s167_s25, %s167_s25 }
  0x20   :  { %191 = vmatpush3.msra.mxu0 %v56_v2  ;;  %p246_p10 = scmp.ne.s32.totalorder %s167_s25, %s245_s26  ;;  %p251_p12 = scmp.lt.s32.totalorder %s245_s26, %s245_s26 }
  0x21   :  { %192 = vmatprep.subr.mxu0 %v55_v4 }
  0x22   :  { %193 = vmatpush3.msra.mxu0 %v55_v4  ;;  %p252_p13 = por %p251_p12, %p250_p11 }
  0x23   :  { %194 = vmatprep.subr.mxu0 %v54_v5 }
  0x24   :  { %195 = vmatpush3.msra.mxu0 %v54_v5  ;;  %v51_v7 = vld [vmem:[#allocation2 + $0x8] sm:$0xff]  ;;  %v50_v9 = vld [vmem:[#allocation2] sm:$0xff]  ;;  %p253_p0 = pnand %p252_p13, %p246_p10 }
  0x25   :  { %197 = vmatmul.mubr.msk.f32.vlgmr.msra.gmra.mxu0 %vm58_vm1, %v53_v6 }
  0xe5   :  { %v198_v8 = vpop.f32.mrf.mxu0 }
  0xe6   :  { %v141_v10 = vadd.f32 %v198_v8, %v51_v7 }
  0xe7   :  { %v131_v11 = vpop.f32.mrf.mxu0 }
  0xe8   :  { %144 = vst.msk [vmem:[#allocation2 + $0x8] sm:$0xff] %vm47_vm0, %v141_v10  ;;  %v140_v12 = vadd.f32 %v131_v11, %v50_v9 }
  0xea   :  { %143 = vst.msk [vmem:[#allocation2] sm:$0xff] %vm47_vm0, %v140_v12 }
  0xef   :  { %v149_v14 = vld [vmem:[#allocation2 + $0x8] sm:$0xff] }
  0xf0   :  { %v158_v15 = vadd.f32 %v181_v13, %v149_v14 }
  0xf1   :  { %v148_v16 = vld [vmem:[#allocation2] sm:$0xff] }
  0xf2   :  { %v157_v17 = vadd.f32 %v181_v13, %v148_v16  ;;  %160 = vst.msk [vmem:[#allocation8 + $0x8] sm:$0xff] %vm47_vm0, %v158_v15 }
  0xf4   :  { %159 = vst.msk [vmem:[#allocation8] sm:$0xff] %vm47_vm0, %v157_v17 }
  0xf5   :  { %256 = shalt.err (!%p253_p0)
}
  0xf6   :  { %172 = dma.vmem_to_hbm [thread:$0]  %s167_s25, 256, %s329_s3, [#allocation5], %s272_s15, %s272_s15, %s273_s16  }
  0xf7   :  { %269 = dma.done.wait [#allocation5], 256  }
  0xf8   :  { %270 = vsyncadd [#allocation5], 4294967040 }
  0xf9   :  { %176 = vsyncpa [#allocation4], 1 }
  0xfa   :  { %177 = vsyncpa [#allocation7], 1 }
  0xfb   :  { %178 = vsyncpa [#allocation5], 1 }

</bundles_post_ra>
